<compile_context>
chip_gen: v7x
topology: tpu7x:2x2x1
jax: 0.10.0
libtpu: 0.0.40
codegen_flags: <defaults>
</compile_context>

<pallas_src>
import math
import functools

import jax
import jax.numpy as jnp
from jax.experimental import pallas as pl
from jax.experimental.pallas import tpu as pltpu


def _lp_lstm_kernel(x_ref, w_ih_ref, w_hh_ref, b_ref, ps_ref, po_ref, ret_ref,
                    h0_ref, c0_ref, out_ref, h_ref, c_ref, *,
                    hidden_size, block_T, actual_seq, padded):
    tb = pl.program_id(0)
    H = hidden_size
    Tc, B, I = x_ref.shape  # static block shape

    # h_ref / c_ref have a constant index_map -> they stay resident in VMEM
    # across all time-blocks and double as the recurrent carry.
    @pl.when(tb == 0)
    def _():
        h_ref[...] = h0_ref[...]
        c_ref[...] = c0_ref[...]

    mm_dtype = w_ih_ref.dtype  # f32 by default, bf16 if requested (x path only)

    # --- Hoisted input projection: ONE big MXU matmul per time-block --------
    # (Tc*B, I) @ (I, 4H) + bias; independent of the recurrence.
    x_blk = x_ref[...].reshape(Tc * B, I).astype(mm_dtype)
    gx = jnp.dot(x_blk, w_ih_ref[...], preferred_element_type=jnp.float32)
    gx = (gx + b_ref[...]).reshape(Tc, B, 4 * H)          # f32 gates-from-x

    w_hh = w_hh_ref[...]                                  # (H, 4H), always f32

    # Hoisted broadcasts (not CSE'd by JAX if left inside the loop).
    ret_b = jnp.broadcast_to(ret_ref[...], (B, H))        # (B, H)
    ps_b = jnp.broadcast_to(ps_ref[...], (B, 4 * H))      # post-scale
    po_b = jnp.broadcast_to(po_ref[...], (B, 4 * H))      # post-offset

    hx = h_ref[...]                                       # (B, H)
    cx = c_ref[...]                                       # (B, H)

    if padded:
        # Number of valid timesteps in this block (tail block only).
        nvalid = jnp.minimum(block_T, actual_seq - tb * block_T)

    # --- Serial recurrence over the Tc timesteps of this block --------------
    # Statically unrolled; block_T is capped so live ranges stay bounded.
    # TODO(synk): stage W_hh once per block via pltpu.matmul_push_rhs /
    #             matmul_acc_lhs / matmul_pop to shave the per-step weight push.
    ys = []
    for t in range(block_T):
        gates = gx[t] + jnp.dot(hx, w_hh, preferred_element_type=jnp.float32)
        # One full-width EUP push: tanh over the whole (B, 4H) vreg, then a
        # single FMA recovers sigmoid for the i/f/o columns (weights were
        # pre-scaled by 0.5 on those columns host-side).
        act = jnp.tanh(gates) * ps_b + po_b               # (B, 4H)
        i_g = act[:, 0 * H:1 * H]
        f_g = act[:, 1 * H:2 * H]
        g_g = act[:, 2 * H:3 * H]
        o_g = act[:, 3 * H:4 * H]

        cy = ret_b * f_g * cx + i_g * g_g
        hy = o_g * jnp.tanh(cy) + ret_b * hx
        # TODO(synk): dropout==0.0 / wdropout==0.0 in this config; training-mode
        #             (weight-)dropout not implemented.

        if padded:
            keep = t < nvalid
            hy = jnp.where(keep, hy, hx)
            cy = jnp.where(keep, cy, cx)

        hx, cx = hy, cy
        ys.append(hy)

    # Single lane-dense block store instead of block_T masked 32-lane stores.
    out_ref[...] = jnp.stack(ys).astype(out_ref.dtype)
    h_ref[...] = hx
    c_ref[...] = cx


def _pick_block_T(seq, cap=32):
    """Pick a time-block size; never degrade to tiny blocks for awkward seq."""
    if seq <= cap:
        return seq, seq
    best = 1
    for d in range(cap, 0, -1):
        if seq % d == 0:
            best = d
            break
    if best >= cap // 2:
        return best, seq                     # clean divisor, no padding
    padded_seq = ((seq + cap - 1) // cap) * cap
    return cap, padded_seq                   # pad + mask the tail block


def lp_lstm_forward(x, weight_ih, weight_hh, bias_ih, bias_hh, retention_ratio,
                    h0, c0, *, block_T=None, use_bf16_matmul=False):
    seq, B, I = x.shape
    H = weight_hh.shape[1]
    assert weight_ih.shape == (4 * H, I)

    if block_T is None:
        block_T, seq_padded = _pick_block_T(seq)
    else:
        block_T = max(1, min(block_T, seq))
        seq_padded = ((seq + block_T - 1) // block_T) * block_T
    num_blocks = seq_padded // block_T
    padded = seq_padded != seq

    if padded:
        pad = jnp.zeros((seq_padded - seq, B, I), x.dtype)
        x = jnp.concatenate([x, pad], axis=0)

    # bf16 halves the x / W_ih VMEM + HBM traffic and runs the hoisted matmul
    # at full MXU rate; recurrence and gate math stay f32 either way.
    mm_dtype = jnp.bfloat16 if use_bf16_matmul else jnp.float32

    # Fold sigmoid(z) = 0.5*tanh(z/2) + 0.5 into the weights:
    #   i/f/o columns pre-scaled by 0.5; post FMA uses (scale, offset) below.
    half = jnp.full((1, H), 0.5, jnp.float32)
    one = jnp.ones((1, H), jnp.float32)
    zero = jnp.zeros((1, H), jnp.float32)
    pre = jnp.concatenate([half, half, one, half], axis=1)        # (1, 4H)
    post_scale = pre                                              # [.5,.5,1,.5]
    post_off = jnp.concatenate([half, half, zero, half], axis=1)  # [.5,.5,0,.5]

    w_ih_t = (jnp.transpose(weight_ih) * pre).astype(mm_dtype)            # (I, 4H)
    w_hh_t = (jnp.transpose(weight_hh) * pre).astype(jnp.float32)         # (H, 4H)
    b = ((bias_ih + bias_hh).reshape(1, 4 * H) * pre).astype(jnp.float32) # (1, 4H)
    ret = retention_ratio.reshape(1, H).astype(jnp.float32)               # (1, H)

    kernel = functools.partial(_lp_lstm_kernel, hidden_size=H, block_T=block_T,
                               actual_seq=seq, padded=padded)

    # Generation-aware VMEM budgeting: estimate the per-block footprint and
    # only raise the scoped limit when needed; cap below v7x's 64 MiB physical.
    in_item = 2 if use_bf16_matmul else 4
    vmem_est = (2 * block_T * B * I * in_item        # double-buffered x block
                + 2 * block_T * B * H * 4            # double-buffered out block
                + block_T * B * 4 * H * 4            # gx live value
                + I * 4 * H * in_item                # W_ih^T
                + H * 4 * H * 4                      # W_hh^T
                + 8 * B * H * 4 + 4 * 4 * H * 4)     # states + small vectors
    cp_kwargs = dict(dimension_semantics=("arbitrary",))  # sequential recurrence
    if vmem_est > 12 * 2**20:
        cp_kwargs["vmem_limit_bytes"] = int(min(max(2 * vmem_est, 32 * 2**20),
                                                56 * 2**20))
    compiler_params = pltpu.CompilerParams(**cp_kwargs)

    cost = pl.CostEstimate(
        flops=int(2 * seq_padded * B * (I + H) * 4 * H),
        transcendentals=int(5 * seq_padded * B * H),
        bytes_accessed=int(seq_padded * B * I * in_item
                           + seq_padded * B * H * 4
                           + I * 4 * H * in_item + H * 4 * H * 4
                           + 4 * B * H * 4 + 3 * 4 * H * 4),
    )

    out, hN, cN = pl.pallas_call(
        kernel,
        out_shape=(
            jax.ShapeDtypeStruct((seq_padded, B, H), jnp.float32),
            jax.ShapeDtypeStruct((B, H), jnp.float32),
            jax.ShapeDtypeStruct((B, H), jnp.float32),
        ),
        grid_spec=pltpu.PrefetchScalarGridSpec(
            num_scalar_prefetch=0,
            grid=(num_blocks,),
            in_specs=[
                pl.BlockSpec((block_T, B, I), lambda t: (t, 0, 0)),   # x block
                pl.BlockSpec((I, 4 * H), lambda t: (0, 0)),           # W_ih^T
                pl.BlockSpec((H, 4 * H), lambda t: (0, 0)),           # W_hh^T
                pl.BlockSpec((1, 4 * H), lambda t: (0, 0)),           # bias
                pl.BlockSpec((1, 4 * H), lambda t: (0, 0)),           # post_scale
                pl.BlockSpec((1, 4 * H), lambda t: (0, 0)),           # post_off
                pl.BlockSpec((1, H), lambda t: (0, 0)),               # retention
                pl.BlockSpec((B, H), lambda t: (0, 0)),               # h0
                pl.BlockSpec((B, H), lambda t: (0, 0)),               # c0
            ],
            out_specs=[
                pl.BlockSpec((block_T, B, H), lambda t: (t, 0, 0)),   # per-step hy
                pl.BlockSpec((B, H), lambda t: (0, 0)),               # final h (carry)
                pl.BlockSpec((B, H), lambda t: (0, 0)),               # final c (carry)
            ],
        ),
        compiler_params=compiler_params,
        cost_estimate=cost,
    )(x, w_ih_t, w_hh_t, b, post_scale, post_off, ret, h0, c0)

    if padded:
        out = out[:seq]
    # th.squeeze(th.stack(outputs))
    return jnp.squeeze(out), (hN, cN)


def lp_lstm_reference(x, weight_ih, weight_hh, bias_ih, bias_hh,
                      retention_ratio, h0, c0):
    """Pure-JAX reference (lax.scan) mirroring the PyTorch forward."""
    H = weight_hh.shape[1]

    def step(carry, x_t):
        hx, cx = carry
        gates = (x_t @ weight_ih.T + bias_ih + hx @ weight_hh.T + bias_hh)
        i_g = jax.nn.sigmoid(gates[:, 0 * H:1 * H])
        f_g = jax.nn.sigmoid(gates[:, 1 * H:2 * H])
        c_g = jnp.tanh(gates[:, 2 * H:3 * H])
        o_g = jax.nn.sigmoid(gates[:, 3 * H:4 * H])
        cy = retention_ratio * f_g * cx + i_g * c_g
        hy = o_g * jnp.tanh(cy)
        hy = retention_ratio * hx + hy
        return (hy, cy), hy

    (hN, cN), ys = jax.lax.scan(step, (h0, c0), x)
    return jnp.squeeze(ys), (hN, cN)


if __name__ == "__main__":
    # Small shapes implied by the module: seq=8, batch=2, input=16, hidden=32.
    seq, B, I, H = 8, 2, 16, 32

    key = jax.random.PRNGKey(0)
    k = jax.random.split(key, 8)

    # reset_parameters(): every Parameter (incl. biases and retention_ratio)
    # is re-drawn uniform(-std, std), std = 1/sqrt(hidden_size).
    std = 1.0 / math.sqrt(H)
    weight_ih = jax.random.uniform(k[0], (4 * H, I), jnp.float32, -std, std)
    weight_hh = jax.random.uniform(k[1], (4 * H, H), jnp.float32, -std, std)
    bias_ih = jax.random.uniform(k[2], (4 * H,), jnp.float32, -std, std)
    bias_hh = jax.random.uniform(k[3], (4 * H,), jnp.float32, -std, std)
    retention_ratio = jax.random.uniform(k[4], (H,), jnp.float32, -std, std)

    x = jax.random.normal(k[5], (seq, B, I), jnp.float32)
    h0 = jax.random.normal(k[6], (B, H), jnp.float32)
    c0 = jax.random.normal(k[7], (B, H), jnp.float32)

    out_ref, (hN_ref, cN_ref) = lp_lstm_reference(
        x, weight_ih, weight_hh, bias_ih, bias_hh, retention_ratio, h0, c0)

    # 1) Default f32 path (tight tolerance).
    out, (hN, cN) = lp_lstm_forward(
        x, weight_ih, weight_hh, bias_ih, bias_hh, retention_ratio, h0, c0)
    jax.block_until_ready((out, hN, cN))
    assert out.shape == (seq, B, H)
    assert jnp.allclose(out, out_ref, atol=1e-4, rtol=1e-4)
    assert jnp.allclose(hN, hN_ref, atol=1e-4, rtol=1e-4)
    assert jnp.allclose(cN, cN_ref, atol=1e-4, rtol=1e-4)

    # 2) Padded-tail path (block_T does not divide seq): exercises the mask.
    out_p, (hN_p, cN_p) = lp_lstm_forward(
        x, weight_ih, weight_hh, bias_ih, bias_hh, retention_ratio, h0, c0,
        block_T=3)
    jax.block_until_ready((out_p, hN_p, cN_p))
    assert jnp.allclose(out_p, out_ref, atol=1e-4, rtol=1e-4)
    assert jnp.allclose(hN_p, hN_ref, atol=1e-4, rtol=1e-4)
    assert jnp.allclose(cN_p, cN_ref, atol=1e-4, rtol=1e-4)

    # 3) bf16 input-projection path (looser tolerance; recurrence stays f32).
    out_b, (hN_b, cN_b) = lp_lstm_forward(
        x, weight_ih, weight_hh, bias_ih, bias_hh, retention_ratio, h0, c0,
        use_bf16_matmul=True)
    jax.block_until_ready((out_b, hN_b, cN_b))
    assert jnp.allclose(out_b, out_ref, atol=5e-2, rtol=5e-2)
    assert jnp.allclose(hN_b, hN_ref, atol=5e-2, rtol=5e-2)
    assert jnp.allclose(cN_b, cN_ref, atol=5e-2, rtol=5e-2)

    print("KERNEL_OK")
</pallas_src>

<mosaic_0001>
module attributes {stable_mosaic.version = 11 : i64} {
  func.func @_lp_lstm_kernel(%arg0: i32, %arg1: memref<8x2x16xf32, #tpu.memory_space<vmem>>, %arg2: memref<16x128xf32, #tpu.memory_space<vmem>>, %arg3: memref<32x128xf32, #tpu.memory_space<vmem>>, %arg4: memref<1x128xf32, #tpu.memory_space<vmem>>, %arg5: memref<1x128xf32, #tpu.memory_space<vmem>>, %arg6: memref<1x128xf32, #tpu.memory_space<vmem>>, %arg7: memref<1x32xf32, #tpu.memory_space<vmem>>, %arg8: memref<2x32xf32, #tpu.memory_space<vmem>>, %arg9: memref<2x32xf32, #tpu.memory_space<vmem>>, %arg10: memref<8x2x32xf32, #tpu.memory_space<vmem>>, %arg11: memref<2x32xf32, #tpu.memory_space<vmem>>, %arg12: memref<2x32xf32, #tpu.memory_space<vmem>>) attributes {dimension_semantics = [#tpu.dimension_semantics<arbitrary>], iteration_bounds = array<i64: 1>, scalar_prefetch = 0 : i64, scratch_operands = 0 : i64, tpu.core_type = #tpu.core_type<tc>, window_params = [{transform_indices = @transform_0, window_bounds = array<i64: 8, 2, 16>}, {pipeline_mode = #tpu.pipeline_mode<synchronous>, transform_indices = @transform_1, window_bounds = array<i64: 16, 128>}, {pipeline_mode = #tpu.pipeline_mode<synchronous>, transform_indices = @transform_2, window_bounds = array<i64: 32, 128>}, {pipeline_mode = #tpu.pipeline_mode<synchronous>, transform_indices = @transform_3, window_bounds = array<i64: 1, 128>}, {pipeline_mode = #tpu.pipeline_mode<synchronous>, transform_indices = @transform_4, window_bounds = array<i64: 1, 128>}, {pipeline_mode = #tpu.pipeline_mode<synchronous>, transform_indices = @transform_5, window_bounds = array<i64: 1, 128>}, {pipeline_mode = #tpu.pipeline_mode<synchronous>, transform_indices = @transform_6, window_bounds = array<i64: 1, 32>}, {pipeline_mode = #tpu.pipeline_mode<synchronous>, transform_indices = @transform_7, window_bounds = array<i64: 2, 32>}, {pipeline_mode = #tpu.pipeline_mode<synchronous>, transform_indices = @transform_8, window_bounds = array<i64: 2, 32>}, {transform_indices = @transform_9, window_bounds = array<i64: 8, 2, 32>}, {pipeline_mode = #tpu.pipeline_mode<synchronous>, transform_indices = @transform_10, window_bounds = array<i64: 2, 32>}, {pipeline_mode = #tpu.pipeline_mode<synchronous>, transform_indices = @transform_11, window_bounds = array<i64: 2, 32>}]} {
    %c0_i32 = arith.constant 0 : i32
    %0 = arith.cmpi eq, %arg0, %c0_i32 : i32
    %1 = arith.extui %0 : i1 to i32
    %c0_i32_0 = arith.constant 0 : i32
    %2 = arith.cmpi ne, %1, %c0_i32_0 : i32
    scf.if %2 {
      %c0_34 = arith.constant 0 : index
      %c0_35 = arith.constant 0 : index
      %187 = vector.load %arg8[%c0_34, %c0_35] : memref<2x32xf32, #tpu.memory_space<vmem>>, vector<2x32xf32>
      %c0_36 = arith.constant 0 : index
      %c0_37 = arith.constant 0 : index
      %188 = vector.load %arg11[%c0_36, %c0_37] : memref<2x32xf32, #tpu.memory_space<vmem>>, vector<2x32xf32>
      tpu.vector_store %arg11[%c0_36, %c0_37], %187 {strides = array<i32>} : memref<2x32xf32, #tpu.memory_space<vmem>>, vector<2x32xf32>,
      %c0_38 = arith.constant 0 : index
      %c0_39 = arith.constant 0 : index
      %189 = vector.load %arg9[%c0_38, %c0_39] : memref<2x32xf32, #tpu.memory_space<vmem>>, vector<2x32xf32>
      %c0_40 = arith.constant 0 : index
      %c0_41 = arith.constant 0 : index
      %190 = vector.load %arg12[%c0_40, %c0_41] : memref<2x32xf32, #tpu.memory_space<vmem>>, vector<2x32xf32>
      tpu.vector_store %arg12[%c0_40, %c0_41], %189 {strides = array<i32>} : memref<2x32xf32, #tpu.memory_space<vmem>>, vector<2x32xf32>,
    } else {
    }
    %c0 = arith.constant 0 : index
    %c0_1 = arith.constant 0 : index
    %c0_2 = arith.constant 0 : index
    %3 = vector.load %arg1[%c0, %c0_1, %c0_2] : memref<8x2x16xf32, #tpu.memory_space<vmem>>, vector<8x2x16xf32>
    %4 = vector.shape_cast %3 : vector<8x2x16xf32> to vector<16x16xf32>
    %c0_3 = arith.constant 0 : index
    %c0_4 = arith.constant 0 : index
    %5 = vector.load %arg2[%c0_3, %c0_4] : memref<16x128xf32, #tpu.memory_space<vmem>>, vector<16x128xf32>
    %cst = arith.constant dense<0.000000e+00> : vector<16x128xf32>
    %6 = tpu.matmul %4, %5, %cst {dimension_numbers = #tpu.dot_dimension_numbers<[1], [0], [0], [1], [0, 0, 1, 1], [], []>} : vector<16x16xf32>, vector<16x128xf32>, vector<16x128xf32> -> vector<16x128xf32>
    %c0_5 = arith.constant 0 : index
    %c0_6 = arith.constant 0 : index
    %7 = vector.load %arg4[%c0_5, %c0_6] : memref<1x128xf32, #tpu.memory_space<vmem>>, vector<1x128xf32>
    %8 = vector.broadcast %7 : vector<1x128xf32> to vector<16x128xf32>
    %9 = arith.addf %6, %8 : vector<16x128xf32>
    %10 = vector.shape_cast %9 : vector<16x128xf32> to vector<8x2x128xf32>
    %c0_7 = arith.constant 0 : index
    %c0_8 = arith.constant 0 : index
    %11 = vector.load %arg3[%c0_7, %c0_8] : memref<32x128xf32, #tpu.memory_space<vmem>>, vector<32x128xf32>
    %c0_9 = arith.constant 0 : index
    %c0_10 = arith.constant 0 : index
    %12 = vector.load %arg7[%c0_9, %c0_10] : memref<1x32xf32, #tpu.memory_space<vmem>>, vector<1x32xf32>
    %13 = vector.shape_cast %12 : vector<1x32xf32> to vector<1x32xf32>
    %14 = vector.broadcast %13 : vector<1x32xf32> to vector<2x32xf32>
    %c0_11 = arith.constant 0 : index
    %c0_12 = arith.constant 0 : index
    %15 = vector.load %arg5[%c0_11, %c0_12] : memref<1x128xf32, #tpu.memory_space<vmem>>, vector<1x128xf32>
    %16 = vector.shape_cast %15 : vector<1x128xf32> to vector<1x128xf32>
    %17 = vector.broadcast %16 : vector<1x128xf32> to vector<2x128xf32>
    %c0_13 = arith.constant 0 : index
    %c0_14 = arith.constant 0 : index
    %18 = vector.load %arg6[%c0_13, %c0_14] : memref<1x128xf32, #tpu.memory_space<vmem>>, vector<1x128xf32>
    %19 = vector.shape_cast %18 : vector<1x128xf32> to vector<1x128xf32>
    %20 = vector.broadcast %19 : vector<1x128xf32> to vector<2x128xf32>
    %c0_15 = arith.constant 0 : index
    %c0_16 = arith.constant 0 : index
    %21 = vector.load %arg11[%c0_15, %c0_16] : memref<2x32xf32, #tpu.memory_space<vmem>>, vector<2x32xf32>
    %c0_17 = arith.constant 0 : index
    %c0_18 = arith.constant 0 : index
    %22 = vector.load %arg12[%c0_17, %c0_18] : memref<2x32xf32, #tpu.memory_space<vmem>>, vector<2x32xf32>
    %23 = vector.extract_strided_slice %10 {offsets = [0, 0, 0], sizes = [1, 2, 128], strides = [1, 1, 1]} : vector<8x2x128xf32> to vector<1x2x128xf32>
    %24 = vector.shape_cast %23 : vector<1x2x128xf32> to vector<2x128xf32>
    %cst_19 = arith.constant dense<0.000000e+00> : vector<2x128xf32>
    %25 = tpu.matmul %21, %11, %cst_19 {dimension_numbers = #tpu.dot_dimension_numbers<[1], [0], [0], [1], [0, 0, 1, 1], [], []>} : vector<2x32xf32>, vector<32x128xf32>, vector<2x128xf32> -> vector<2x128xf32>
    %26 = arith.addf %24, %25 : vector<2x128xf32>
    %27 = math.tanh %26 : vector<2x128xf32>
    %28 = arith.mulf %27, %17 : vector<2x128xf32>
    %29 = arith.addf %28, %20 : vector<2x128xf32>
    %30 = vector.extract_strided_slice %29 {offsets = [0, 0], sizes = [2, 32], strides = [1, 1]} : vector<2x128xf32> to vector<2x32xf32>
    %31 = vector.extract_strided_slice %29 {offsets = [0, 32], sizes = [2, 32], strides = [1, 1]} : vector<2x128xf32> to vector<2x32xf32>
    %32 = vector.extract_strided_slice %29 {offsets = [0, 64], sizes = [2, 32], strides = [1, 1]} : vector<2x128xf32> to vector<2x32xf32>
    %33 = vector.extract_strided_slice %29 {offsets = [0, 96], sizes = [2, 32], strides = [1, 1]} : vector<2x128xf32> to vector<2x32xf32>
    %34 = arith.mulf %14, %31 : vector<2x32xf32>
    %35 = arith.mulf %34, %22 : vector<2x32xf32>
    %36 = arith.mulf %30, %32 : vector<2x32xf32>
    %37 = arith.addf %35, %36 : vector<2x32xf32>
    %38 = math.tanh %37 : vector<2x32xf32>
    %39 = arith.mulf %33, %38 : vector<2x32xf32>
    %40 = arith.mulf %14, %21 : vector<2x32xf32>
    %41 = arith.addf %39, %40 : vector<2x32xf32>
    %42 = vector.extract_strided_slice %10 {offsets = [1, 0, 0], sizes = [1, 2, 128], strides = [1, 1, 1]} : vector<8x2x128xf32> to vector<1x2x128xf32>
    %43 = vector.shape_cast %42 : vector<1x2x128xf32> to vector<2x128xf32>
    %cst_20 = arith.constant dense<0.000000e+00> : vector<2x128xf32>
    %44 = tpu.matmul %41, %11, %cst_20 {dimension_numbers = #tpu.dot_dimension_numbers<[1], [0], [0], [1], [0, 0, 1, 1], [], []>} : vector<2x32xf32>, vector<32x128xf32>, vector<2x128xf32> -> vector<2x128xf32>
    %45 = arith.addf %43, %44 : vector<2x128xf32>
    %46 = math.tanh %45 : vector<2x128xf32>
    %47 = arith.mulf %46, %17 : vector<2x128xf32>
    %48 = arith.addf %47, %20 : vector<2x128xf32>
    %49 = vector.extract_strided_slice %48 {offsets = [0, 0], sizes = [2, 32], strides = [1, 1]} : vector<2x128xf32> to vector<2x32xf32>
    %50 = vector.extract_strided_slice %48 {offsets = [0, 32], sizes = [2, 32], strides = [1, 1]} : vector<2x128xf32> to vector<2x32xf32>
    %51 = vector.extract_strided_slice %48 {offsets = [0, 64], sizes = [2, 32], strides = [1, 1]} : vector<2x128xf32> to vector<2x32xf32>
    %52 = vector.extract_strided_slice %48 {offsets = [0, 96], sizes = [2, 32], strides = [1, 1]} : vector<2x128xf32> to vector<2x32xf32>
    %53 = arith.mulf %14, %50 : vector<2x32xf32>
    %54 = arith.mulf %53, %37 : vector<2x32xf32>
    %55 = arith.mulf %49, %51 : vector<2x32xf32>
    %56 = arith.addf %54, %55 : vector<2x32xf32>
    %57 = math.tanh %56 : vector<2x32xf32>
    %58 = arith.mulf %52, %57 : vector<2x32xf32>
    %59 = arith.mulf %14, %41 : vector<2x32xf32>
    %60 = arith.addf %58, %59 : vector<2x32xf32>
    %61 = vector.extract_strided_slice %10 {offsets = [2, 0, 0], sizes = [1, 2, 128], strides = [1, 1, 1]} : vector<8x2x128xf32> to vector<1x2x128xf32>
    %62 = vector.shape_cast %61 : vector<1x2x128xf32> to vector<2x128xf32>
    %cst_21 = arith.constant dense<0.000000e+00> : vector<2x128xf32>
    %63 = tpu.matmul %60, %11, %cst_21 {dimension_numbers = #tpu.dot_dimension_numbers<[1], [0], [0], [1], [0, 0, 1, 1], [], []>} : vector<2x32xf32>, vector<32x128xf32>, vector<2x128xf32> -> vector<2x128xf32>
    %64 = arith.addf %62, %63 : vector<2x128xf32>
    %65 = math.tanh %64 : vector<2x128xf32>
    %66 = arith.mulf %65, %17 : vector<2x128xf32>
    %67 = arith.addf %66, %20 : vector<2x128xf32>
    %68 = vector.extract_strided_slice %67 {offsets = [0, 0], sizes = [2, 32], strides = [1, 1]} : vector<2x128xf32> to vector<2x32xf32>
    %69 = vector.extract_strided_slice %67 {offsets = [0, 32], sizes = [2, 32], strides = [1, 1]} : vector<2x128xf32> to vector<2x32xf32>
    %70 = vector.extract_strided_slice %67 {offsets = [0, 64], sizes = [2, 32], strides = [1, 1]} : vector<2x128xf32> to vector<2x32xf32>
    %71 = vector.extract_strided_slice %67 {offsets = [0, 96], sizes = [2, 32], strides = [1, 1]} : vector<2x128xf32> to vector<2x32xf32>
    %72 = arith.mulf %14, %69 : vector<2x32xf32>
    %73 = arith.mulf %72, %56 : vector<2x32xf32>
    %74 = arith.mulf %68, %70 : vector<2x32xf32>
    %75 = arith.addf %73, %74 : vector<2x32xf32>
    %76 = math.tanh %75 : vector<2x32xf32>
    %77 = arith.mulf %71, %76 : vector<2x32xf32>
    %78 = arith.mulf %14, %60 : vector<2x32xf32>
    %79 = arith.addf %77, %78 : vector<2x32xf32>
    %80 = vector.extract_strided_slice %10 {offsets = [3, 0, 0], sizes = [1, 2, 128], strides = [1, 1, 1]} : vector<8x2x128xf32> to vector<1x2x128xf32>
    %81 = vector.shape_cast %80 : vector<1x2x128xf32> to vector<2x128xf32>
    %cst_22 = arith.constant dense<0.000000e+00> : vector<2x128xf32>
    %82 = tpu.matmul %79, %11, %cst_22 {dimension_numbers = #tpu.dot_dimension_numbers<[1], [0], [0], [1], [0, 0, 1, 1], [], []>} : vector<2x32xf32>, vector<32x128xf32>, vector<2x128xf32> -> vector<2x128xf32>
    %83 = arith.addf %81, %82 : vector<2x128xf32>
    %84 = math.tanh %83 : vector<2x128xf32>
    %85 = arith.mulf %84, %17 : vector<2x128xf32>
    %86 = arith.addf %85, %20 : vector<2x128xf32>
    %87 = vector.extract_strided_slice %86 {offsets = [0, 0], sizes = [2, 32], strides = [1, 1]} : vector<2x128xf32> to vector<2x32xf32>
    %88 = vector.extract_strided_slice %86 {offsets = [0, 32], sizes = [2, 32], strides = [1, 1]} : vector<2x128xf32> to vector<2x32xf32>
    %89 = vector.extract_strided_slice %86 {offsets = [0, 64], sizes = [2, 32], strides = [1, 1]} : vector<2x128xf32> to vector<2x32xf32>
    %90 = vector.extract_strided_slice %86 {offsets = [0, 96], sizes = [2, 32], strides = [1, 1]} : vector<2x128xf32> to vector<2x32xf32>
    %91 = arith.mulf %14, %88 : vector<2x32xf32>
    %92 = arith.mulf %91, %75 : vector<2x32xf32>
    %93 = arith.mulf %87, %89 : vector<2x32xf32>
    %94 = arith.addf %92, %93 : vector<2x32xf32>
    %95 = math.tanh %94 : vector<2x32xf32>
    %96 = arith.mulf %90, %95 : vector<2x32xf32>
    %97 = arith.mulf %14, %79 : vector<2x32xf32>
    %98 = arith.addf %96, %97 : vector<2x32xf32>
    %99 = vector.extract_strided_slice %10 {offsets = [4, 0, 0], sizes = [1, 2, 128], strides = [1, 1, 1]} : vector<8x2x128xf32> to vector<1x2x128xf32>
    %100 = vector.shape_cast %99 : vector<1x2x128xf32> to vector<2x128xf32>
    %cst_23 = arith.constant dense<0.000000e+00> : vector<2x128xf32>
    %101 = tpu.matmul %98, %11, %cst_23 {dimension_numbers = #tpu.dot_dimension_numbers<[1], [0], [0], [1], [0, 0, 1, 1], [], []>} : vector<2x32xf32>, vector<32x128xf32>, vector<2x128xf32> -> vector<2x128xf32>
    %102 = arith.addf %100, %101 : vector<2x128xf32>
    %103 = math.tanh %102 : vector<2x128xf32>
    %104 = arith.mulf %103, %17 : vector<2x128xf32>
    %105 = arith.addf %104, %20 : vector<2x128xf32>
    %106 = vector.extract_strided_slice %105 {offsets = [0, 0], sizes = [2, 32], strides = [1, 1]} : vector<2x128xf32> to vector<2x32xf32>
    %107 = vector.extract_strided_slice %105 {offsets = [0, 32], sizes = [2, 32], strides = [1, 1]} : vector<2x128xf32> to vector<2x32xf32>
    %108 = vector.extract_strided_slice %105 {offsets = [0, 64], sizes = [2, 32], strides = [1, 1]} : vector<2x128xf32> to vector<2x32xf32>
    %109 = vector.extract_strided_slice %105 {offsets = [0, 96], sizes = [2, 32], strides = [1, 1]} : vector<2x128xf32> to vector<2x32xf32>
    %110 = arith.mulf %14, %107 : vector<2x32xf32>
    %111 = arith.mulf %110, %94 : vector<2x32xf32>
    %112 = arith.mulf %106, %108 : vector<2x32xf32>
    %113 = arith.addf %111, %112 : vector<2x32xf32>
    %114 = math.tanh %113 : vector<2x32xf32>
    %115 = arith.mulf %109, %114 : vector<2x32xf32>
    %116 = arith.mulf %14, %98 : vector<2x32xf32>
    %117 = arith.addf %115, %116 : vector<2x32xf32>
    %118 = vector.extract_strided_slice %10 {offsets = [5, 0, 0], sizes = [1, 2, 128], strides = [1, 1, 1]} : vector<8x2x128xf32> to vector<1x2x128xf32>
    %119 = vector.shape_cast %118 : vector<1x2x128xf32> to vector<2x128xf32>
    %cst_24 = arith.constant dense<0.000000e+00> : vector<2x128xf32>
    %120 = tpu.matmul %117, %11, %cst_24 {dimension_numbers = #tpu.dot_dimension_numbers<[1], [0], [0], [1], [0, 0, 1, 1], [], []>} : vector<2x32xf32>, vector<32x128xf32>, vector<2x128xf32> -> vector<2x128xf32>
    %121 = arith.addf %119, %120 : vector<2x128xf32>
    %122 = math.tanh %121 : vector<2x128xf32>
    %123 = arith.mulf %122, %17 : vector<2x128xf32>
    %124 = arith.addf %123, %20 : vector<2x128xf32>
    %125 = vector.extract_strided_slice %124 {offsets = [0, 0], sizes = [2, 32], strides = [1, 1]} : vector<2x128xf32> to vector<2x32xf32>
    %126 = vector.extract_strided_slice %124 {offsets = [0, 32], sizes = [2, 32], strides = [1, 1]} : vector<2x128xf32> to vector<2x32xf32>
    %127 = vector.extract_strided_slice %124 {offsets = [0, 64], sizes = [2, 32], strides = [1, 1]} : vector<2x128xf32> to vector<2x32xf32>
    %128 = vector.extract_strided_slice %124 {offsets = [0, 96], sizes = [2, 32], strides = [1, 1]} : vector<2x128xf32> to vector<2x32xf32>
    %129 = arith.mulf %14, %126 : vector<2x32xf32>
    %130 = arith.mulf %129, %113 : vector<2x32xf32>
    %131 = arith.mulf %125, %127 : vector<2x32xf32>
    %132 = arith.addf %130, %131 : vector<2x32xf32>
    %133 = math.tanh %132 : vector<2x32xf32>
    %134 = arith.mulf %128, %133 : vector<2x32xf32>
    %135 = arith.mulf %14, %117 : vector<2x32xf32>
    %136 = arith.addf %134, %135 : vector<2x32xf32>
    %137 = vector.extract_strided_slice %10 {offsets = [6, 0, 0], sizes = [1, 2, 128], strides = [1, 1, 1]} : vector<8x2x128xf32> to vector<1x2x128xf32>
    %138 = vector.shape_cast %137 : vector<1x2x128xf32> to vector<2x128xf32>
    %cst_25 = arith.constant dense<0.000000e+00> : vector<2x128xf32>
    %139 = tpu.matmul %136, %11, %cst_25 {dimension_numbers = #tpu.dot_dimension_numbers<[1], [0], [0], [1], [0, 0, 1, 1], [], []>} : vector<2x32xf32>, vector<32x128xf32>, vector<2x128xf32> -> vector<2x128xf32>
    %140 = arith.addf %138, %139 : vector<2x128xf32>
    %141 = math.tanh %140 : vector<2x128xf32>
    %142 = arith.mulf %141, %17 : vector<2x128xf32>
    %143 = arith.addf %142, %20 : vector<2x128xf32>
    %144 = vector.extract_strided_slice %143 {offsets = [0, 0], sizes = [2, 32], strides = [1, 1]} : vector<2x128xf32> to vector<2x32xf32>
    %145 = vector.extract_strided_slice %143 {offsets = [0, 32], sizes = [2, 32], strides = [1, 1]} : vector<2x128xf32> to vector<2x32xf32>
    %146 = vector.extract_strided_slice %143 {offsets = [0, 64], sizes = [2, 32], strides = [1, 1]} : vector<2x128xf32> to vector<2x32xf32>
    %147 = vector.extract_strided_slice %143 {offsets = [0, 96], sizes = [2, 32], strides = [1, 1]} : vector<2x128xf32> to vector<2x32xf32>
    %148 = arith.mulf %14, %145 : vector<2x32xf32>
    %149 = arith.mulf %148, %132 : vector<2x32xf32>
    %150 = arith.mulf %144, %146 : vector<2x32xf32>
    %151 = arith.addf %149, %150 : vector<2x32xf32>
    %152 = math.tanh %151 : vector<2x32xf32>
    %153 = arith.mulf %147, %152 : vector<2x32xf32>
    %154 = arith.mulf %14, %136 : vector<2x32xf32>
    %155 = arith.addf %153, %154 : vector<2x32xf32>
    %156 = vector.extract_strided_slice %10 {offsets = [7, 0, 0], sizes = [1, 2, 128], strides = [1, 1, 1]} : vector<8x2x128xf32> to vector<1x2x128xf32>
    %157 = vector.shape_cast %156 : vector<1x2x128xf32> to vector<2x128xf32>
    %cst_26 = arith.constant dense<0.000000e+00> : vector<2x128xf32>
    %158 = tpu.matmul %155, %11, %cst_26 {dimension_numbers = #tpu.dot_dimension_numbers<[1], [0], [0], [1], [0, 0, 1, 1], [], []>} : vector<2x32xf32>, vector<32x128xf32>, vector<2x128xf32> -> vector<2x128xf32>
    %159 = arith.addf %157, %158 : vector<2x128xf32>
    %160 = math.tanh %159 : vector<2x128xf32>
    %161 = arith.mulf %160, %17 : vector<2x128xf32>
    %162 = arith.addf %161, %20 : vector<2x128xf32>
    %163 = vector.extract_strided_slice %162 {offsets = [0, 0], sizes = [2, 32], strides = [1, 1]} : vector<2x128xf32> to vector<2x32xf32>
    %164 = vector.extract_strided_slice %162 {offsets = [0, 32], sizes = [2, 32], strides = [1, 1]} : vector<2x128xf32> to vector<2x32xf32>
    %165 = vector.extract_strided_slice %162 {offsets = [0, 64], sizes = [2, 32], strides = [1, 1]} : vector<2x128xf32> to vector<2x32xf32>
    %166 = vector.extract_strided_slice %162 {offsets = [0, 96], sizes = [2, 32], strides = [1, 1]} : vector<2x128xf32> to vector<2x32xf32>
    %167 = arith.mulf %14, %164 : vector<2x32xf32>
    %168 = arith.mulf %167, %151 : vector<2x32xf32>
    %169 = arith.mulf %163, %165 : vector<2x32xf32>
    %170 = arith.addf %168, %169 : vector<2x32xf32>
    %171 = math.tanh %170 : vector<2x32xf32>
    %172 = arith.mulf %166, %171 : vector<2x32xf32>
    %173 = arith.mulf %14, %155 : vector<2x32xf32>
    %174 = arith.addf %172, %173 : vector<2x32xf32>
    %175 = vector.shape_cast %41 : vector<2x32xf32> to vector<1x2x32xf32>
    %176 = vector.shape_cast %60 : vector<2x32xf32> to vector<1x2x32xf32>
    %177 = vector.shape_cast %79 : vector<2x32xf32> to vector<1x2x32xf32>
    %178 = vector.shape_cast %98 : vector<2x32xf32> to vector<1x2x32xf32>
    %179 = vector.shape_cast %117 : vector<2x32xf32> to vector<1x2x32xf32>
    %180 = vector.shape_cast %136 : vector<2x32xf32> to vector<1x2x32xf32>
    %181 = vector.shape_cast %155 : vector<2x32xf32> to vector<1x2x32xf32>
    %182 = vector.shape_cast %174 : vector<2x32xf32> to vector<1x2x32xf32>
    %183 = tpu.concatenate %175, %176, %177, %178, %179, %180, %181, %182 in 0 : vector<1x2x32xf32>, vector<1x2x32xf32>, vector<1x2x32xf32>, vector<1x2x32xf32>, vector<1x2x32xf32>, vector<1x2x32xf32>, vector<1x2x32xf32>, vector<1x2x32xf32> -> vector<8x2x32xf32>
    %c0_27 = arith.constant 0 : index
    %c0_28 = arith.constant 0 : index
    %c0_29 = arith.constant 0 : index
    %184 = vector.load %arg10[%c0_27, %c0_28, %c0_29] : memref<8x2x32xf32, #tpu.memory_space<vmem>>, vector<8x2x32xf32>
    tpu.vector_store %arg10[%c0_27, %c0_28, %c0_29], %183 {strides = array<i32>} : memref<8x2x32xf32, #tpu.memory_space<vmem>>, vector<8x2x32xf32>,
    %c0_30 = arith.constant 0 : index
    %c0_31 = arith.constant 0 : index
    %185 = vector.load %arg11[%c0_30, %c0_31] : memref<2x32xf32, #tpu.memory_space<vmem>>, vector<2x32xf32>
    tpu.vector_store %arg11[%c0_30, %c0_31], %174 {strides = array<i32>} : memref<2x32xf32, #tpu.memory_space<vmem>>, vector<2x32xf32>,
    %c0_32 = arith.constant 0 : index
    %c0_33 = arith.constant 0 : index
    %186 = vector.load %arg12[%c0_32, %c0_33] : memref<2x32xf32, #tpu.memory_space<vmem>>, vector<2x32xf32>
    tpu.vector_store %arg12[%c0_32, %c0_33], %170 {strides = array<i32>} : memref<2x32xf32, #tpu.memory_space<vmem>>, vector<2x32xf32>,
    return
  }
  func.func @transform_0(%arg0: i32) -> (i32, i32, i32) {
    %c0_i32 = arith.constant 0 : i32
    %c0_i32_0 = arith.constant 0 : i32
    %c0_i32_1 = arith.constant 0 : i32
    return %arg0, %c0_i32, %c0_i32_0 : i32, i32, i32
  }
  func.func @transform_1(%arg0: i32) -> (i32, i32) {
    %c0_i32 = arith.constant 0 : i32
    %c0_i32_0 = arith.constant 0 : i32
    %c0_i32_1 = arith.constant 0 : i32
    return %c0_i32, %c0_i32_0 : i32, i32
  }
  func.func @transform_2(%arg0: i32) -> (i32, i32) {
    %c0_i32 = arith.constant 0 : i32
    %c0_i32_0 = arith.constant 0 : i32
    %c0_i32_1 = arith.constant 0 : i32
    return %c0_i32, %c0_i32_0 : i32, i32
  }
  func.func @transform_3(%arg0: i32) -> (i32, i32) {
    %c0_i32 = arith.constant 0 : i32
    %c0_i32_0 = arith.constant 0 : i32
    %c0_i32_1 = arith.constant 0 : i32
    return %c0_i32, %c0_i32_0 : i32, i32
  }
  func.func @transform_4(%arg0: i32) -> (i32, i32) {
    %c0_i32 = arith.constant 0 : i32
    %c0_i32_0 = arith.constant 0 : i32
    %c0_i32_1 = arith.constant 0 : i32
    return %c0_i32, %c0_i32_0 : i32, i32
  }
  func.func @transform_5(%arg0: i32) -> (i32, i32) {
    %c0_i32 = arith.constant 0 : i32
    %c0_i32_0 = arith.constant 0 : i32
    %c0_i32_1 = arith.constant 0 : i32
    return %c0_i32, %c0_i32_0 : i32, i32
  }
  func.func @transform_6(%arg0: i32) -> (i32, i32) {
    %c0_i32 = arith.constant 0 : i32
    %c0_i32_0 = arith.constant 0 : i32
    %c0_i32_1 = arith.constant 0 : i32
    return %c0_i32, %c0_i32_0 : i32, i32
  }
  func.func @transform_7(%arg0: i32) -> (i32, i32) {
    %c0_i32 = arith.constant 0 : i32
    %c0_i32_0 = arith.constant 0 : i32
    %c0_i32_1 = arith.constant 0 : i32
    return %c0_i32, %c0_i32_0 : i32, i32
  }
  func.func @transform_8(%arg0: i32) -> (i32, i32) {
    %c0_i32 = arith.constant 0 : i32
    %c0_i32_0 = arith.constant 0 : i32
    %c0_i32_1 = arith.constant 0 : i32
    return %c0_i32, %c0_i32_0 : i32, i32
  }
  func.func @transform_9(%arg0: i32) -> (i32, i32, i32) {
    %c0_i32 = arith.constant 0 : i32
    %c0_i32_0 = arith.constant 0 : i32
    %c0_i32_1 = arith.constant 0 : i32
    return %arg0, %c0_i32, %c0_i32_0 : i32, i32, i32
  }
  func.func @transform_10(%arg0: i32) -> (i32, i32) {
    %c0_i32 = arith.constant 0 : i32
    %c0_i32_0 = arith.constant 0 : i32
    %c0_i32_1 = arith.constant 0 : i32
    return %c0_i32, %c0_i32_0 : i32, i32
  }
  func.func @transform_11(%arg0: i32) -> (i32, i32) {
    %c0_i32 = arith.constant 0 : i32
    %c0_i32_0 = arith.constant 0 : i32
    %c0_i32_1 = arith.constant 0 : i32
    return %c0_i32, %c0_i32_0 : i32, i32
  }
}

</mosaic_0001>

<bundles_post_ra>
// kernel: tpu_custom_call.1
= control target key start
LH: loop header
LB: loop body
LE: loop exit
PB: predicated region body
PF: predicated region fallthrough
CT: control target
= control target key end

     0   :  { %17 = vsyncpa [#allocation3], 0  ;;  %s2190_s0 = inlined_call_operand.hbm [shape: f32[8,2,16], index: 0, kind: input, shape index: {}]   ;;  %s2191_s1 = inlined_call_operand.hbm [shape: f32[16,128], index: 1, kind: input, shape index: {}]   ;;  %s2192_s2 = inlined_call_operand.hbm [shape: f32[32,128], index: 2, kind: input, shape index: {}]   ;;  %s2193_s3 = inlined_call_operand.vmem [shape: f32[1,128], index: 3, kind: input, shape index: {}]   ;;  %s2194_s4 = inlined_call_operand.vmem [shape: f32[1,128], index: 4, kind: input, shape index: {}]   ;;  %s2195_s5 = inlined_call_operand.vmem [shape: f32[1,128], index: 5, kind: input, shape index: {}]   ;;  %s2196_s6 = inlined_call_operand.vmem [shape: f32[1,32], index: 6, kind: input, shape index: {}]   ;;  %s2197_s7 = inlined_call_operand.vmem [shape: f32[2,32], index: 7, kind: input, shape index: {}]   ;;  %s2198_s8 = inlined_call_operand.vmem [shape: f32[2,32], index: 8, kind: input, shape index: {}]   ;;  %s2199_s9 = inlined_call_operand.hbm [shape: f32[8,2,32], index: 9, kind: output, shape index: {0}]   ;;  %s2200_s10 = inlined_call_operand.hbm [shape: f32[2,32], index: 10, kind: output, shape index: {1}]   ;;  %s2201_s11 = inlined_call_operand.hbm [shape: f32[2,32], index: 11, kind: output, shape index: {2}]  }
   0x1   :  { %18 = vsyncpa [#allocation6], 0 }
   0x2   :  { %19 = vsyncpa [#allocation4], 0 }
   0x3   :  { %20 = vsyncpa [#allocation10], 0  ;;  %s1796_s17 = smov [#allocation5]   ;;  %s1656_s21 = scalar_lea.hbm %s2191_s1, 256 }
   0x4   :  { %s38_s18 = sshll.u32 %s1796_s17, 4  ;;  %p1657_p0 = scmp.ne.s32.totalorder %s2191_s1, %s1656_s21  ;;  %s39_s18 = int_to_ptr.vmem [resolvable:$true] %s38_s18 }
   0x5   :  { %p1660_p1 = scmp.lt.u32.totalorder %s1656_s21, %s2191_s1 }
   0x7   :  { %p1662_p2 = pnand %p1660_p1, %p1657_p0 }
   0x9   :  { %1665 = shalt.err (!%p1662_p2)
}
   0xa   :  { %s1666_s26 = scalar_lea.vmem %s39_s18, 256  ;;  %p1671_p4 = scmp.lt.s32.totalorder %s39_s18, %s39_s18 }
   0xb   :  { %p1667_p3 = scmp.ne.s32.totalorder %s39_s18, %s1666_s26  ;;  %p1672_p5 = scmp.lt.s32.totalorder %s1666_s26, %s1666_s26 }
   0xd   :  { %p1673_p6 = por %p1672_p5, %p1671_p4 }
   0xf   :  { %p1674_p7 = pnand %p1673_p6, %p1667_p3 }
  0x11   :  { %1677 = shalt.err (!%p1674_p7)
}
  0x12   :  { %s1797_s27 = smov 128   ;;  %s1798_s28 = smov 8  }
  0x13   :  { %44 = dma.hbm_to_vmem [thread:$0]  %s2191_s1, 256, %s39_s18, [#allocation6], %s1797_s27, %s1797_s27, %s1798_s28  }
  0x14   :  { %s1799_s12 = smov [#allocation2]   ;;  %s1678_s16 = scalar_lea.hbm %s2190_s0, 256 }
  0x15   :  { %s26_s13 = sshll.u32 %s1799_s12, 4  ;;  %p1679_p8 = scmp.ne.s32.totalorder %s2190_s0, %s1678_s16  ;;  %s27_s13 = int_to_ptr.vmem [resolvable:$true] %s26_s13 }
  0x16   :  { %p1682_p9 = scmp.lt.u32.totalorder %s1678_s16, %s2190_s0 }
  0x18   :  { %p1684_p10 = pnand %p1682_p9, %p1679_p8 }
  0x1a   :  { %1687 = shalt.err (!%p1684_p10)
}
  0x1b   :  { %s1688_s22 = scalar_lea.vmem %s27_s13, 256  ;;  %p1693_p12 = scmp.lt.s32.totalorder %s27_s13, %s27_s13 }
  0x1c   :  { %p1689_p11 = scmp.ne.s32.totalorder %s27_s13, %s1688_s22  ;;  %p1694_p13 = scmp.lt.s32.totalorder %s1688_s22, %s1688_s22 }
  0x1e   :  { %p1695_p0 = por %p1694_p13, %p1693_p12 }
  0x20   :  { %p1696_p1 = pnand %p1695_p0, %p1689_p11 }
  0x22   :  { %1699 = shalt.err (!%p1696_p1)
}
  0x23   :  { %s1800_s1 = smov 32   ;;  %s1801_s18 = smov 2  }
  0x24   :  { %32 = dma.hbm_to_vmem [thread:$0]  %s2190_s0, 256, %s27_s13, [#allocation3], %s1800_s1, %s1800_s1, %s1801_s18  }
  0x25   :  { %s1802_s25 = smov [#allocation7]   ;;  %s1700_s12 = scalar_lea.hbm %s2192_s2, 512 }
  0x26   :  { %s50_s26 = sshll.u32 %s1802_s25, 4  ;;  %p1701_p2 = scmp.ne.s32.totalorder %s2192_s2, %s1700_s12  ;;  %s51_s26 = int_to_ptr.vmem [resolvable:$true] %s50_s26 }
  0x27   :  { %p1704_p3 = scmp.lt.u32.totalorder %s1700_s12, %s2192_s2 }
  0x29   :  { %p1706_p4 = pnand %p1704_p3, %p1701_p2 }
  0x2b   :  { %1709 = shalt.err (!%p1706_p4)
}
  0x2c   :  { %s1710_s19 = scalar_lea.vmem %s51_s26, 512  ;;  %p1715_p6 = scmp.lt.s32.totalorder %s51_s26, %s51_s26 }
  0x2d   :  { %p1711_p5 = scmp.ne.s32.totalorder %s51_s26, %s1710_s19  ;;  %p1716_p7 = scmp.lt.s32.totalorder %s1710_s19, %s1710_s19 }
  0x2f   :  { %p1717_p8 = por %p1716_p7, %p1715_p6 }
  0x31   :  { %p1718_p9 = pnand %p1717_p8, %p1711_p5 }
  0x33   :  { %1721 = shalt.err (!%p1718_p9)
}
  0x34   :  { %56 = dma.hbm_to_vmem [thread:$0]  %s2192_s2, 512, %s51_s26, [#allocation6], %s1797_s27, %s1797_s27, %s1798_s28  }
  0x35   :  { %1788 = dma.done.wait [#allocation3], 256  }
  0x36   :  { %1789 = vsyncadd [#allocation3], 4294967040 }
  0x37   :  { %1790 = dma.done.wait [#allocation6], 768  }
  0x38   :  { %1791 = vsyncadd [#allocation6], 4294966528  ;;  %v117_v0 = vlaneseq  ;;  %v1803_v1 = vmov 0.0|0.0   ;;  %v1804_v2 = vmov 1983009808   ;;  %vm1805_vm0 = vmmov 0  }
  0x39   :  { %1560 = vmatprep.subr.bf16.mxu1 %v1803_v1  ;;  %v115_v3 = vunpack.c.l.s4 %v1804_v2  ;;  %v1806_v4 = vmov 0.0   ;;  %v95_v7 = vld [vmem:[#allocation5] sm:$0xff]  ;;  %v96_v8 = vld [vmem:[#allocation5 + $0x8] sm:$0xff]  ;;  %v270_v9 = vld [vmem:[#allocation7] sm:$0xff]  ;;  %vm83_vm1 = vcmask 254976   ;;  %vm146_vm2 = vcmask 130048  }
  0x3a   :  { %1476 = vmatprep.mubr.msk.f32.mxu1 %vm1805_vm0, %v1806_v4  ;;  %v118_v6 = vshrl.u32 %v117_v0, 7  ;;  %v1556_v11 = vpack.c.bf16 %v96_v8, %v95_v7  ;;  %v271_v12 = vld [vmem:[#allocation7 + $0x8] sm:$0xff]  ;;  %v87_v13 = vld [vmem:[#allocation2] sm:$0x3]  ;;  %v88_v14 = vld [vmem:[#allocation2 + $0x2] sm:$0x3] }
  0x3b   :  { %v116_v5 = vunpack.c.0.s8 %v115_v3  ;;  %v1922_v15 = vpack.c.bf16 %v271_v12, %v270_v9  ;;  %v89_v16 = vld [vmem:[#allocation2 + $0x4] sm:$0x3]  ;;  %v90_v17 = vld [vmem:[#allocation2 + $0x6] sm:$0x3]  ;;  %v112_v18 = vcombine.low %v87_v13, %v88_v14  ;;  %v91_v19 = vld [vmem:[#allocation2 + $0x8] sm:$0x3] }
  0x3c   :  { %1557 = vmatprep.subr.bf16.mxu0 %v1556_v11  ;;  %v113_v20 = vcombine.low %v89_v16, %v90_v17  ;;  %v92_v21 = vld [vmem:[#allocation2 + $0xa] sm:$0x3]  ;;  %v93_v22 = vld [vmem:[#allocation2 + $0xc] sm:$0x3]  ;;  %v94_v23 = vld [vmem:[#allocation2 + $0xe] sm:$0x3] }
  0x3d   :  { %v1920_v10 = vsub.s32 %v116_v5, %v118_v6  ;;  %1559 = vmatpush3.bf16.msra.mxu0 %v1556_v11  ;;  %1562 = vmatpush3.bf16.msra.mxu1 %v1922_v15  ;;  %v129_v25 = vcombine.low %v91_v19, %v92_v21  ;;  %v130_v26 = vcombine.low %v93_v22, %v94_v23  ;;  %v272_v27 = vld [vmem:[#allocation7 + $0x10] sm:$0xff]  ;;  %v273_v28 = vld [vmem:[#allocation7 + $0x18] sm:$0xff]  ;;  %v82_v29 = vld [vmem:[%s2197_s7] sm:$0x3]  ;;  %vm297_vm3 = vcmask 261120   ;;  %s1807_s24 = smov 96  }
  0x3e   :  { %1563 = vmatprep.subr.bf16.mxu1 %v1803_v1  ;;  %v1931_v31 = vpack.c.bf16 %v273_v28, %v272_v27  ;;  %84 = vst.msk [vmem:[#allocation9] sm:$0x3] %vm83_vm1, %v82_v29  ;;  %1566 = vmatprep.subr.bf16.mxu0 %v1803_v1  ;;  %v85_v37 = vld [vmem:[%s2198_s8] sm:$0x3]  ;;  %s1808_s25 = smov 64   ;;  %s1810_s29 = smov [#allocation8]  }
  0x3f   :  { %v120_v24 = vrot.slane %v112_v18, %v1920_v10  ;;  %v127_v30 = vrot.slane %v113_v20, %v1920_v10  ;;  %v137_v32 = vrot.slane %v129_v25, %v1920_v10  ;;  %v144_v33 = vrot.slane %v130_v26, %v1920_v10  ;;  %86 = vst.msk [vmem:[#allocation11] sm:$0x3] %vm83_vm1, %v85_v37  ;;  %v1403_v38 = vld [vmem:[%s2193_s3] ss:$0 sm:$0xff]  ;;  %s1363_s30 = sshll.u32 %s1810_s29, 4  ;;  %s1811_s12 = smov [#allocation11]   ;;  %s2135_s30 = int_to_ptr.vmem [resolvable:$true] %s1363_s30 }
  0x40   :  { %v1968_v47 = vld [vmem:[%s2194_s4] ss:$0 sm:$0xff]  ;;  %s1386_s14 = sshll.u32 %s1811_s12, 4  ;;  %s2139_s14 = int_to_ptr.vmem [resolvable:$true] %s1386_s14 }
  0x41   :  { %v128_v34 = vcombine.low %v120_v24, %v127_v30  ;;  %v145_v35 = vcombine.low %v137_v32, %v144_v33  ;;  %1565 = vmatpush3.bf16.msra.mxu1 %v1931_v31  ;;  %v1973_v49 = vld [vmem:[%s2195_s5] ss:$0 sm:$0xff]  ;;  %s1809_s5 = smov [#allocation9]  }
  0x42   :  { %1572 = vmatprep.subr.bf16.mxu1 %v1803_v1  ;;  %v1983_v53 = vld [vmem:[%s2196_s6] ss:$0 sm:$0xff]  ;;  %s1376_s6 = sshll.u32 %s1809_s5, 4  ;;  %s1377_s6 = int_to_ptr.vmem [resolvable:$true] %s1376_s6 }
  0x43   :  { %1465 = vmatprep.mubr.msk.f32.mxu0 %vm146_vm2, %v128_v34  ;;  %s1722_s15 = scalar_lea.vmem %s1377_s6, 32  ;;  %p1727_p11 = scmp.lt.s32.totalorder %s1377_s6, %s1377_s6 }
  0x44   :  { %1466 = vmatmul.mubr.msk.f32.vlgmr.msra.gmra.mrb[0].mxu0 %vm146_vm2, %v145_v35  ;;  %p1723_p10 = scmp.ne.s32.totalorder %s1377_s6, %s1722_s15  ;;  %p1728_p12 = scmp.lt.s32.totalorder %s1722_s15, %s1722_s15 }
  0x45   :  { %1568 = vmatpush3.bf16.msra.mxu0 %v1922_v15  ;;  %1487 = vmatprep.mubr.msk.f32.mxu0 %vm1805_vm0, %v1806_v4  ;;  %v295_v36 = vld [vmem:[#allocation9] sm:$0x3] }
  0x46   :  { %1569 = vmatprep.subr.bf16.mxu0 %v1803_v1  ;;  %1477 = vmatmul.mubr.msk.f32.vlgmr.msra.gmra.mrb[0].mxu1 %vm297_vm3, %v295_v36  ;;  %v296_v56 = vld [vmem:[#allocation11] sm:$0x3]  ;;  %v406_v61 = vmul.f32 %v1983_v53, %v295_v36  ;;  %p1729_p13 = por %p1728_p12, %p1727_p11 }
  0x47   :  { %1574 = vmatpush3.bf16.msra.mxu1 %v1922_v15  ;;  %1498 = vmatprep.mubr.msk.f32.mxu1 %vm1805_vm0, %v1806_v4 }
  0x48   :  { %1575 = vmatprep.subr.bf16.mxu1 %v1803_v1  ;;  %v414_v0 = vrot.slane %v406_v61, %v1920_v10  ;;  %p1730_p0 = pnand %p1729_p13, %p1723_p10 }
  0x49   :  { %1571 = vmatpush3.bf16.msra.mxu0 %v1931_v31 }
  0x4a   :  { %1578 = vmatprep.subr.bf16.mxu0 %v1803_v1 }
  0x4b   :  { %1577 = vmatpush3.bf16.msra.mxu1 %v1931_v31 }
  0x4c   :  { %1584 = vmatprep.subr.bf16.mxu1 %v1803_v1 }
 0x117   :  { %v1467_v39 = vpop.f32.mrb[0].mxu0 }
 0x118   :  { %v1959_v40 = vadd.f32 %v1467_v39, %v1403_v38  ;;  %v217_v41 = vpop.f32.mrb[1].mxu0 }
 0x119   :  { %v1961_v42 = vadd.f32 %v1403_v38, %v217_v41  ;;  %v367_v43 = vpop.f32.mrb[0].mxu1 }
 0x11a   :  { %v1478_v45 = vpop.f32.mrb[1].mxu1 }
 0x11b   :  { %v235_v44 = vrot.slane %v1961_v42, %v1920_v10  ;;  %v228_v36 = vcombine.high %v1961_v42, %v1961_v42 }
 0x11d   :  { %v371_v46 = vadd.f32 %v367_v43, %v235_v44  ;;  %v243_v9 = vcombine.high %v235_v44, %v235_v44  ;;  %v242_v37 = vrot.slane %v228_v36, %v1920_v10 }
 0x11f   :  { %1624 = vtanh.f32 %v371_v46 }
 0x129   :  { %v1625_v48 = vpop.eup %1624 }
 0x12a   :  { %v373_v50 = vmul.f32 %v1625_v48, %v1968_v47 }
 0x12c   :  { %v374_v51 = vadd.f32 %v1973_v49, %v373_v50 }
 0x12e   :  { %v382_v52 = vrot.slane %v374_v51, %v1920_v10 }
 0x130   :  { %383 = vrot.lane.b32.xlu0 %v382_v52, %s1807_s24 }
 0x134   :  { %388 = vrot.lane.b32.xlu0 %v374_v51, %s1808_s25 }
 0x1a2   :  { %v384_v54 = vpop.permute.xlu0 %383 }
 0x1a3   :  { %v386_v55 = vmul.f32 %v1983_v53, %v384_v54 }
 0x1a5   :  { %v387_v58 = vmul.f32 %v386_v55, %v296_v56 }
 0x1a6   :  { %v389_v57 = vpop.permute.xlu0 %388 }
 0x1a7   :  { %v391_v59 = vmul.f32 %v389_v57, %v374_v51 }
 0x1a9   :  { %v392_v60 = vadd.f32 %v391_v59, %v387_v58 }
 0x1ab   :  { %1626 = vtanh.f32 %v392_v60 }
 0x1b5   :  { %v1627_v62 = vpop.eup %1626 }
 0x1b6   :  { %v401_v63 = vrot.slane %v1627_v62, %v1920_v10 }
 0x1b8   :  { %402 = vrot.lane.b32.xlu1 %v401_v63, %s1807_s24 }
 0x1bc   :  { %415 = vrot.lane.b32.xlu1 %v414_v0, %s1807_s24 }
 0x22a   :  { %v403_v2 = vpop.permute.xlu1 %402 }
 0x22b   :  { %v405_v3 = vmul.f32 %v403_v2, %v374_v51  ;;  %v244_v2 = vcombine.high %v242_v37, %v242_v37 }
 0x22e   :  { %v416_v5 = vpop.permute.xlu1 %415 }
 0x22f   :  { %v418_v6 = vadd.f32 %v416_v5, %v405_v3 }
 0x231   :  { %v426_v7 = vrot.slane %v418_v6, %v1920_v10 }
 0x233   :  { %427 = vrot.lane.b32.xlu0 %v426_v7, %s1800_s1 }
 0x2a5   :  { %v428_v8 = vpop.permute.xlu0 %427 }
 0x2a6   :  { %1348 = vst.msk [vmem:[#allocation8] sm:$0x3] %vm83_vm1, %v428_v8  ;;  %1488 = vmatmul.mubr.msk.f32.vlgmr.msra.gmra.mrb[2].mxu0 %vm297_vm3, %v428_v8  ;;  %v537_v17 = vmul.f32 %v1983_v53, %v428_v8 }
 0x2a7   :  { %1580 = vmatpush3.bf16.msra.mxu0 %v1922_v15  ;;  %1509 = vmatprep.mubr.msk.f32.mxu0 %vm1805_vm0, %v1806_v4 }
 0x2a8   :  { %1581 = vmatprep.subr.bf16.mxu0 %v1803_v1  ;;  %v545_v20 = vrot.slane %v537_v17, %v1920_v10 }
 0x2ab   :  { %1583 = vmatpush3.bf16.msra.mxu0 %v1931_v31 }
 0x2ac   :  { %1590 = vmatprep.subr.bf16.mxu0 %v1803_v1 }
 0x379   :  { %v497_v11 = vpop.f32.mrb[2].mxu0 }
 0x37a   :  { %v501_v12 = vadd.f32 %v497_v11, %v243_v9  ;;  %v1489_v13 = vpop.f32.mrb[3].mxu0 }
 0x37c   :  { %1628 = vtanh.f32 %v501_v12 }
 0x386   :  { %v1629_v14 = vpop.eup %1628 }
 0x387   :  { %v503_v16 = vmul.f32 %v1629_v14, %v1968_v47 }
 0x389   :  { %v504_v18 = vadd.f32 %v1973_v49, %v503_v16 }
 0x38b   :  { %518 = vrot.lane.b32.xlu0 %v504_v18, %s1808_s25  ;;  %v512_v19 = vrot.slane %v504_v18, %v1920_v10 }
 0x38d   :  { %513 = vrot.lane.b32.xlu1 %v512_v19, %s1807_s24 }
 0x38f   :  { %546 = vrot.lane.b32.xlu0 %v545_v20, %s1807_s24 }
 0x3fd   :  { %v519_v21 = vpop.permute.xlu0 %518 }
 0x3fe   :  { %v521_v24 = vmul.f32 %v519_v21, %v504_v18 }
 0x3ff   :  { %v514_v22 = vpop.permute.xlu1 %513 }
 0x400   :  { %v516_v23 = vmul.f32 %v1983_v53, %v514_v22 }
 0x401   :  { %v547_v32 = vpop.permute.xlu0 %546 }
 0x402   :  { %v517_v25 = vmul.f32 %v516_v23, %v392_v60 }
 0x404   :  { %v522_v26 = vadd.f32 %v521_v24, %v517_v25 }
 0x406   :  { %1630 = vtanh.f32 %v522_v26 }
 0x410   :  { %v1631_v27 = vpop.eup %1630 }
 0x411   :  { %v531_v28 = vrot.slane %v1631_v27, %v1920_v10 }
 0x413   :  { %532 = vrot.lane.b32.xlu1 %v531_v28, %s1807_s24 }
 0x485   :  { %v533_v29 = vpop.permute.xlu1 %532 }
 0x486   :  { %v535_v30 = vmul.f32 %v533_v29, %v504_v18  ;;  %v252_v29 = vrot.slane %v1959_v40, %v1920_v10 }
 0x488   :  { %v549_v33 = vadd.f32 %v547_v32, %v535_v30 }
 0x48a   :  { %v557_v34 = vrot.slane %v549_v33, %v1920_v10 }
 0x48c   :  { %558 = vrot.lane.b32.xlu1 %v557_v34, %s1800_s1 }
 0x4fe   :  { %v559_v35 = vpop.permute.xlu1 %558 }
 0x4ff   :  { %1349 = vst.msk [vmem:[#allocation8 + $0x2] sm:$0x3] %vm83_vm1, %v559_v35  ;;  %1499 = vmatmul.mubr.msk.f32.vlgmr.msra.gmra.mrb[2].mxu1 %vm297_vm3, %v559_v35  ;;  %v668_v45 = vmul.f32 %v1983_v53, %v559_v35 }
 0x500   :  { %1586 = vmatpush3.bf16.msra.mxu1 %v1922_v15  ;;  %1520 = vmatprep.mubr.msk.f32.mxu1 %vm1805_vm0, %v1806_v4 }
 0x501   :  { %1587 = vmatprep.subr.bf16.mxu1 %v1803_v1  ;;  %v676_v42 = vrot.slane %v668_v45, %v1920_v10 }
 0x504   :  { %1589 = vmatpush3.bf16.msra.mxu1 %v1931_v31 }
 0x505   :  { %1596 = vmatprep.subr.bf16.mxu1 %v1803_v1 }
 0x5d2   :  { %v628_v38 = vpop.f32.mrb[2].mxu1 }
 0x5d3   :  { %v632_v39 = vadd.f32 %v628_v38, %v242_v37  ;;  %v1500_v41 = vpop.f32.mrb[3].mxu1 }
 0x5d5   :  { %1632 = vtanh.f32 %v632_v39 }
 0x5df   :  { %v1633_v43 = vpop.eup %1632 }
 0x5e0   :  { %v634_v44 = vmul.f32 %v1633_v43, %v1968_v47 }
 0x5e2   :  { %v635_v46 = vadd.f32 %v1973_v49, %v634_v44 }
 0x5e4   :  { %649 = vrot.lane.b32.xlu1 %v635_v46, %s1808_s25  ;;  %v643_v48 = vrot.slane %v635_v46, %v1920_v10 }
 0x5e6   :  { %644 = vrot.lane.b32.xlu0 %v643_v48, %s1807_s24 }
 0x5e8   :  { %677 = vrot.lane.b32.xlu1 %v676_v42, %s1807_s24 }
 0x656   :  { %v650_v50 = vpop.permute.xlu1 %649 }
 0x657   :  { %v652_v54 = vmul.f32 %v650_v50, %v635_v46 }
 0x658   :  { %v645_v51 = vpop.permute.xlu0 %644 }
 0x659   :  { %v647_v52 = vmul.f32 %v1983_v53, %v645_v51 }
 0x65a   :  { %v678_v61 = vpop.permute.xlu1 %677 }
 0x65b   :  { %v648_v55 = vmul.f32 %v647_v52, %v522_v26 }
 0x65d   :  { %v653_v56 = vadd.f32 %v652_v54, %v648_v55 }
 0x65f   :  { %1634 = vtanh.f32 %v653_v56 }
 0x669   :  { %v1635_v57 = vpop.eup %1634 }
 0x66a   :  { %v662_v58 = vrot.slane %v1635_v57, %v1920_v10 }
 0x66c   :  { %663 = vrot.lane.b32.xlu0 %v662_v58, %s1807_s24  ;;  %v260_v58 = vcombine.high %v252_v29, %v252_v29 }
 0x6de   :  { %v664_v59 = vpop.permute.xlu0 %663 }
 0x6df   :  { %v666_v60 = vmul.f32 %v664_v59, %v635_v46 }
 0x6e1   :  { %v680_v62 = vadd.f32 %v678_v61, %v666_v60 }
 0x6e3   :  { %v688_v63 = vrot.slane %v680_v62, %v1920_v10 }
 0x6e5   :  { %689 = vrot.lane.b32.xlu0 %v688_v63, %s1800_s1 }
 0x757   :  { %v690_v0 = vpop.permute.xlu0 %689 }
 0x758   :  { %1350 = vst.msk [vmem:[#allocation8 + $0x4] sm:$0x3] %vm83_vm1, %v690_v0  ;;  %1510 = vmatmul.mubr.msk.f32.vlgmr.msra.gmra.mrb[4].mxu0 %vm297_vm3, %v690_v0  ;;  %v799_v9 = vmul.f32 %v1983_v53, %v690_v0 }
 0x759   :  { %1592 = vmatpush3.bf16.msra.mxu0 %v1922_v15  ;;  %1531 = vmatprep.mubr.msk.f32.mxu0 %vm1805_vm0, %v1806_v4 }
 0x75a   :  { %1593 = vmatprep.subr.bf16.mxu0 %v1803_v1  ;;  %v807_v13 = vrot.slane %v799_v9, %v1920_v10 }
 0x75d   :  { %1595 = vmatpush3.bf16.msra.mxu0 %v1931_v31 }
 0x75e   :  { %1602 = vmatprep.subr.bf16.mxu0 %v1803_v1 }
 0x82b   :  { %v759_v3 = vpop.f32.mrb[4].mxu0 }
 0x82c   :  { %v763_v5 = vadd.f32 %v759_v3, %v244_v2  ;;  %v1511_v6 = vpop.f32.mrb[5].mxu0 }
 0x82e   :  { %1636 = vtanh.f32 %v763_v5 }
 0x838   :  { %v1637_v7 = vpop.eup %1636 }
 0x839   :  { %v765_v8 = vmul.f32 %v1637_v7, %v1968_v47 }
 0x83b   :  { %v766_v11 = vadd.f32 %v1973_v49, %v765_v8 }
 0x83d   :  { %780 = vrot.lane.b32.xlu0 %v766_v11, %s1808_s25  ;;  %v774_v12 = vrot.slane %v766_v11, %v1920_v10 }
 0x83f   :  { %775 = vrot.lane.b32.xlu1 %v774_v12, %s1807_s24 }
 0x841   :  { %808 = vrot.lane.b32.xlu0 %v807_v13, %s1807_s24 }
 0x8af   :  { %v781_v14 = vpop.permute.xlu0 %780 }
 0x8b0   :  { %v783_v18 = vmul.f32 %v781_v14, %v766_v11 }
 0x8b1   :  { %v776_v16 = vpop.permute.xlu1 %775 }
 0x8b2   :  { %v778_v17 = vmul.f32 %v1983_v53, %v776_v16 }
 0x8b3   :  { %v809_v25 = vpop.permute.xlu0 %808 }
 0x8b4   :  { %v779_v19 = vmul.f32 %v778_v17, %v653_v56 }
 0x8b6   :  { %v784_v20 = vadd.f32 %v783_v18, %v779_v19  ;;  %v245_v18 = vcombine.high %v1959_v40, %v1959_v40 }
 0x8b8   :  { %1638 = vtanh.f32 %v784_v20  ;;  %v259_v19 = vrot.slane %v245_v18, %v1920_v10 }
 0x8c2   :  { %v1639_v21 = vpop.eup %1638 }
 0x8c3   :  { %v793_v22 = vrot.slane %v1639_v21, %v1920_v10 }
 0x8c5   :  { %794 = vrot.lane.b32.xlu1 %v793_v22, %s1807_s24 }
 0x937   :  { %v795_v23 = vpop.permute.xlu1 %794 }
 0x938   :  { %v797_v24 = vmul.f32 %v795_v23, %v766_v11 }
 0x93a   :  { %v811_v26 = vadd.f32 %v809_v25, %v797_v24 }
 0x93c   :  { %v819_v27 = vrot.slane %v811_v26, %v1920_v10 }
 0x93e   :  { %820 = vrot.lane.b32.xlu1 %v819_v27, %s1800_s1 }
 0x9b0   :  { %v821_v28 = vpop.permute.xlu1 %820 }
 0x9b1   :  { %1351 = vst.msk [vmem:[#allocation8 + $0x6] sm:$0x3] %vm83_vm1, %v821_v28  ;;  %1521 = vmatmul.mubr.msk.f32.vlgmr.msra.gmra.mrb[4].mxu1 %vm297_vm3, %v821_v28  ;;  %v930_v36 = vmul.f32 %v1983_v53, %v821_v28 }
 0x9b2   :  { %1598 = vmatpush3.bf16.msra.mxu1 %v1922_v15  ;;  %1542 = vmatprep.mubr.msk.f32.mxu1 %vm1805_vm0, %v1806_v4 }
 0x9b3   :  { %1599 = vmatprep.subr.bf16.mxu1 %v1803_v1  ;;  %v938_v39 = vrot.slane %v930_v36, %v1920_v10 }
 0x9b6   :  { %1601 = vmatpush3.bf16.msra.mxu1 %v1931_v31 }
 0xa84   :  { %v890_v30 = vpop.f32.mrb[4].mxu1 }
 0xa85   :  { %v894_v32 = vadd.f32 %v890_v30, %v252_v29  ;;  %v1522_v33 = vpop.f32.mrb[5].mxu1 }
 0xa87   :  { %1640 = vtanh.f32 %v894_v32 }
 0xa91   :  { %v1641_v34 = vpop.eup %1640 }
 0xa92   :  { %v896_v35 = vmul.f32 %v1641_v34, %v1968_v47 }
 0xa94   :  { %v897_v37 = vadd.f32 %v1973_v49, %v896_v35 }
 0xa96   :  { %911 = vrot.lane.b32.xlu1 %v897_v37, %s1808_s25  ;;  %v905_v38 = vrot.slane %v897_v37, %v1920_v10 }
 0xa98   :  { %906 = vrot.lane.b32.xlu0 %v905_v38, %s1807_s24 }
 0xa9a   :  { %939 = vrot.lane.b32.xlu1 %v938_v39, %s1807_s24 }
 0xb08   :  { %v912_v41 = vpop.permute.xlu1 %911 }
 0xb09   :  { %v914_v45 = vmul.f32 %v912_v41, %v897_v37 }
 0xb0a   :  { %v907_v43 = vpop.permute.xlu0 %906 }
 0xb0b   :  { %v909_v44 = vmul.f32 %v1983_v53, %v907_v43 }
 0xb0c   :  { %v940_v54 = vpop.permute.xlu1 %939 }
 0xb0d   :  { %v910_v46 = vmul.f32 %v909_v44, %v784_v20 }
 0xb0f   :  { %v915_v48 = vadd.f32 %v914_v45, %v910_v46  ;;  %v261_v45 = vcombine.high %v259_v19, %v259_v19 }
 0xb11   :  { %1642 = vtanh.f32 %v915_v48 }
 0xb1b   :  { %v1643_v42 = vpop.eup %1642 }
 0xb1c   :  { %v924_v50 = vrot.slane %v1643_v42, %v1920_v10 }
 0xb1e   :  { %925 = vrot.lane.b32.xlu0 %v924_v50, %s1807_s24 }
 0xb90   :  { %v926_v51 = vpop.permute.xlu0 %925 }
 0xb91   :  { %v928_v52 = vmul.f32 %v926_v51, %v897_v37 }
 0xb93   :  { %v942_v55 = vadd.f32 %v940_v54, %v928_v52 }
 0xb95   :  { %v950_v56 = vrot.slane %v942_v55, %v1920_v10 }
 0xb97   :  { %951 = vrot.lane.b32.xlu0 %v950_v56, %s1800_s1 }
 0xc09   :  { %v952_v57 = vpop.permute.xlu0 %951 }
 0xc0a   :  { %1352 = vst.msk [vmem:[#allocation8 + $0x8] sm:$0x3] %vm83_vm1, %v952_v57  ;;  %1532 = vmatmul.mubr.msk.f32.vlgmr.msra.gmra.mrb[6].mxu0 %vm297_vm3, %v952_v57  ;;  %v1061_v0 = vmul.f32 %v1983_v53, %v952_v57 }
 0xc0b   :  { %1604 = vmatpush3.bf16.msra.mxu0 %v1922_v15  ;;  %1553 = vmatprep.mubr.msk.f32.mxu0 %vm1805_vm0, %v1806_v4 }
 0xc0c   :  { %1605 = vmatprep.subr.bf16.mxu0 %v1803_v1  ;;  %v1069_v1 = vrot.slane %v1061_v0, %v1920_v10 }
 0xc0f   :  { %1607 = vmatpush3.bf16.msra.mxu0 %v1931_v31 }
 0xcdd   :  { %v1021_v59 = vpop.f32.mrb[6].mxu0 }
 0xcde   :  { %v1025_v60 = vadd.f32 %v1021_v59, %v260_v58  ;;  %v1533_v61 = vpop.f32.mrb[7].mxu0 }
 0xce0   :  { %1644 = vtanh.f32 %v1025_v60 }
 0xcea   :  { %v1645_v62 = vpop.eup %1644 }
 0xceb   :  { %v1027_v63 = vmul.f32 %v1645_v62, %v1968_v47 }
 0xced   :  { %v1028_v2 = vadd.f32 %v1973_v49, %v1027_v63 }
 0xcef   :  { %1042 = vrot.lane.b32.xlu0 %v1028_v2, %s1808_s25  ;;  %v1036_v4 = vrot.slane %v1028_v2, %v1920_v10 }
 0xcf1   :  { %1037 = vrot.lane.b32.xlu1 %v1036_v4, %s1807_s24 }
 0xcf3   :  { %1070 = vrot.lane.b32.xlu0 %v1069_v1, %s1807_s24 }
 0xd61   :  { %v1043_v15 = vpop.permute.xlu0 %1042 }
 0xd62   :  { %v1045_v5 = vmul.f32 %v1043_v15, %v1028_v2 }
 0xd63   :  { %v1038_v31 = vpop.permute.xlu1 %1037 }
 0xd64   :  { %v1040_v3 = vmul.f32 %v1983_v53, %v1038_v31 }
 0xd65   :  { %v1071_v13 = vpop.permute.xlu0 %1070 }
 0xd66   :  { %v1041_v6 = vmul.f32 %v1040_v3, %v915_v48 }
 0xd68   :  { %v1046_v7 = vadd.f32 %v1045_v5, %v1041_v6 }
 0xd6a   :  { %1646 = vtanh.f32 %v1046_v7 }
 0xd74   :  { %v1647_v8 = vpop.eup %1646 }
 0xd75   :  { %v1055_v9 = vrot.slane %v1647_v8, %v1920_v10 }
 0xd77   :  { %1056 = vrot.lane.b32.xlu1 %v1055_v9, %s1807_s24 }
 0xde9   :  { %v1057_v11 = vpop.permute.xlu1 %1056 }
 0xdea   :  { %v1059_v12 = vmul.f32 %v1057_v11, %v1028_v2 }
 0xdec   :  { %v1073_v14 = vadd.f32 %v1071_v13, %v1059_v12 }
 0xdee   :  { %v1081_v16 = vrot.slane %v1073_v14, %v1920_v10 }
 0xdf0   :  { %1082 = vrot.lane.b32.xlu1 %v1081_v16, %s1800_s1 }
 0xe62   :  { %v1083_v17 = vpop.permute.xlu1 %1082 }
 0xe63   :  { %1353 = vst.msk [vmem:[#allocation8 + $0xa] sm:$0x3] %vm83_vm1, %v1083_v17  ;;  %1543 = vmatmul.mubr.msk.f32.vlgmr.msra.gmra.mrb[6].mxu1 %vm297_vm3, %v1083_v17  ;;  %v1192_v25 = vmul.f32 %v1983_v53, %v1083_v17 }
 0xe65   :  { %v1200_v40 = vrot.slane %v1192_v25, %v1920_v10 }
 0xf36   :  { %v1152_v20 = vpop.f32.mrb[6].mxu1 }
 0xf37   :  { %v1156_v21 = vadd.f32 %v1152_v20, %v259_v19  ;;  %v1544_v22 = vpop.f32.mrb[7].mxu1 }
 0xf39   :  { %1648 = vtanh.f32 %v1156_v21 }
 0xf43   :  { %v1649_v23 = vpop.eup %1648 }
 0xf44   :  { %v1158_v24 = vmul.f32 %v1649_v23, %v1968_v47 }
 0xf46   :  { %v1159_v26 = vadd.f32 %v1973_v49, %v1158_v24 }
 0xf48   :  { %1173 = vrot.lane.b32.xlu1 %v1159_v26, %s1808_s25  ;;  %v1167_v27 = vrot.slane %v1159_v26, %v1920_v10 }
 0xf4a   :  { %1168 = vrot.lane.b32.xlu0 %v1167_v27, %s1807_s24 }
 0xf4c   :  { %1201 = vrot.lane.b32.xlu1 %v1200_v40, %s1807_s24 }
 0xfba   :  { %v1174_v28 = vpop.permute.xlu1 %1173 }
 0xfbb   :  { %v1176_v32 = vmul.f32 %v1174_v28, %v1159_v26 }
 0xfbc   :  { %v1169_v29 = vpop.permute.xlu0 %1168 }
 0xfbd   :  { %v1171_v30 = vmul.f32 %v1983_v53, %v1169_v29 }
 0xfbe   :  { %v1202_v39 = vpop.permute.xlu1 %1201 }
 0xfbf   :  { %v1172_v33 = vmul.f32 %v1171_v30, %v1046_v7 }
 0xfc1   :  { %v1177_v34 = vadd.f32 %v1176_v32, %v1172_v33 }
 0xfc3   :  { %1650 = vtanh.f32 %v1177_v34 }
 0xfcd   :  { %v1651_v35 = vpop.eup %1650 }
 0xfce   :  { %v1186_v36 = vrot.slane %v1651_v35, %v1920_v10 }
 0xfd0   :  { %1187 = vrot.lane.b32.xlu0 %v1186_v36, %s1807_s24 }
0x1042   :  { %v1188_v37 = vpop.permute.xlu0 %1187 }
0x1043   :  { %v1190_v38 = vmul.f32 %v1188_v37, %v1159_v26 }
0x1045   :  { %v1204_v41 = vadd.f32 %v1202_v39, %v1190_v38 }
0x1047   :  { %v1212_v43 = vrot.slane %v1204_v41, %v1920_v10 }
0x1049   :  { %1213 = vrot.lane.b32.xlu0 %v1212_v43, %s1800_s1 }
0x10bb   :  { %v1214_v44 = vpop.permute.xlu0 %1213 }
0x10bc   :  { %1354 = vst.msk [vmem:[#allocation8 + $0xc] sm:$0x3] %vm83_vm1, %v1214_v44  ;;  %1554 = vmatmul.mubr.msk.f32.vlgmr.msra.gmra.mrb[8].mxu0 %vm297_vm3, %v1214_v44  ;;  %v1323_v52 = vmul.f32 %v1983_v53, %v1214_v44 }
0x10be   :  { %v1331_v56 = vrot.slane %v1323_v52, %v1920_v10 }
0x118f   :  { %v1283_v46 = vpop.f32.mrb[8].mxu0 }
0x1190   :  { %v1287_v48 = vadd.f32 %v1283_v46, %v261_v45  ;;  %v1555_v42 = vpop.f32.mrb[9].mxu0 }
0x1192   :  { %1652 = vtanh.f32 %v1287_v48 }
0x119c   :  { %v1653_v50 = vpop.eup %1652 }
0x119d   :  { %v1289_v51 = vmul.f32 %v1653_v50, %v1968_v47 }
0x119f   :  { %v1290_v54 = vadd.f32 %v1973_v49, %v1289_v51 }
0x11a1   :  { %1304 = vrot.lane.b32.xlu0 %v1290_v54, %s1808_s25  ;;  %v1298_v55 = vrot.slane %v1290_v54, %v1920_v10 }
0x11a3   :  { %1299 = vrot.lane.b32.xlu1 %v1298_v55, %s1807_s24 }
0x11a5   :  { %1332 = vrot.lane.b32.xlu0 %v1331_v56, %s1807_s24 }
0x1213   :  { %v1305_v57 = vpop.permute.xlu0 %1304 }
0x1214   :  { %v1307_v60 = vmul.f32 %v1305_v57, %v1290_v54 }
0x1215   :  { %v1300_v58 = vpop.permute.xlu1 %1299 }
0x1216   :  { %v1302_v59 = vmul.f32 %v1983_v53, %v1300_v58 }
0x1217   :  { %v1333_v2 = vpop.permute.xlu0 %1332 }
0x1218   :  { %v1303_v47 = vmul.f32 %v1302_v59, %v1177_v34 }
0x121a   :  { %v1308_v61 = vadd.f32 %v1307_v60, %v1303_v47 }
0x121c   :  { %1654 = vtanh.f32 %v1308_v61  ;;  %1357 = vst.msk [vmem:[#allocation11] sm:$0x3] %vm83_vm1, %v1308_v61 }
0x1226   :  { %v1655_v49 = vpop.eup %1654 }
0x1227   :  { %v1317_v62 = vrot.slane %v1655_v49, %v1920_v10 }
0x1229   :  { %1318 = vrot.lane.b32.xlu1 %v1317_v62, %s1807_s24 }
0x129b   :  { %v1319_v63 = vpop.permute.xlu1 %1318 }
0x129c   :  { %v1321_v0 = vmul.f32 %v1319_v63, %v1290_v54 }
0x129e   :  { %v1335_v4 = vadd.f32 %v1333_v2, %v1321_v0 }
0x12a0   :  { %v1343_v1 = vrot.slane %v1335_v4, %v1920_v10 }
0x12a2   :  { %1344 = vrot.lane.b32.xlu1 %v1343_v1, %s1800_s1 }
0x1314   :  { %v1345_v53 = vpop.permute.xlu1 %1344 }
0x1315   :  { %1355 = vst.msk [vmem:[#allocation8 + $0xe] sm:$0x3] %vm83_vm1, %v1345_v53  ;;  %1356 = vst.msk [vmem:[#allocation9] sm:$0x3] %vm83_vm1, %v1345_v53 }
0x1316   :  { %1733 = shalt.err (!%p1730_p0)
}
0x1317   :  { %s1734_s19 = scalar_lea.hbm %s2200_s10, 32 }
0x1318   :  { %p1735_p1 = scmp.ne.s32.totalorder %s2200_s10, %s1734_s19  ;;  %p1738_p2 = scmp.lt.u32.totalorder %s1734_s19, %s2200_s10 }
0x131a   :  { %p1740_p3 = pnand %p1738_p2, %p1735_p1 }
0x131c   :  { %1743 = shalt.err (!%p1740_p3)
}
0x131d   :  { %1379 = dma.vmem_to_hbm [thread:$0]  %s1377_s6, 32, %s2200_s10, [#allocation10]  }
0x131e   :  { %s1744_s20 = scalar_lea.vmem %s2135_s30, 256  ;;  %p1749_p5 = scmp.lt.s32.totalorder %s2135_s30, %s2135_s30 }
0x131f   :  { %p1745_p4 = scmp.ne.s32.totalorder %s2135_s30, %s1744_s20  ;;  %p1750_p6 = scmp.lt.s32.totalorder %s1744_s20, %s1744_s20 }
0x1321   :  { %p1751_p7 = por %p1750_p6, %p1749_p5 }
0x1323   :  { %p1752_p8 = pnand %p1751_p7, %p1745_p4 }
0x1325   :  { %1755 = shalt.err (!%p1752_p8)
}
0x1326   :  { %s1756_s22 = scalar_lea.hbm %s2199_s9, 256 }
0x1327   :  { %p1757_p9 = scmp.ne.s32.totalorder %s2199_s9, %s1756_s22  ;;  %p1760_p10 = scmp.lt.u32.totalorder %s1756_s22, %s2199_s9 }
0x1329   :  { %p1762_p11 = pnand %p1760_p10, %p1757_p9 }
0x132b   :  { %1765 = shalt.err (!%p1762_p11)
}
0x132c   :  { %1369 = dma.vmem_to_hbm [thread:$0]  %s2135_s30, 256, %s2199_s9, [#allocation4], %s1800_s1, %s1800_s1, %s1801_s18  }
0x132d   :  { %s1766_s26 = scalar_lea.vmem %s2139_s14, 32  ;;  %p1771_p13 = scmp.lt.s32.totalorder %s2139_s14, %s2139_s14 }
0x132e   :  { %p1767_p12 = scmp.ne.s32.totalorder %s2139_s14, %s1766_s26  ;;  %p1772_p0 = scmp.lt.s32.totalorder %s1766_s26, %s1766_s26 }
0x1330   :  { %p1773_p1 = por %p1772_p0, %p1771_p13 }
0x1332   :  { %p1774_p2 = pnand %p1773_p1, %p1767_p12 }
0x1334   :  { %1777 = shalt.err (!%p1774_p2)
}
0x1335   :  { %s1778_s29 = scalar_lea.hbm %s2201_s11, 32 }
0x1336   :  { %p1779_p3 = scmp.ne.s32.totalorder %s2201_s11, %s1778_s29  ;;  %p1782_p4 = scmp.lt.u32.totalorder %s1778_s29, %s2201_s11 }
0x1338   :  { %p1784_p5 = pnand %p1782_p4, %p1779_p3 }
0x133a   :  { %1787 = shalt.err (!%p1784_p5)
}
0x133b   :  { %1389 = dma.vmem_to_hbm [thread:$0]  %s2139_s14, 32, %s2201_s11, [#allocation10]  }
0x133c   :  { %1792 = dma.done.wait [#allocation4], 256  }
0x133d   :  { %1793 = vsyncadd [#allocation4], 4294967040 }
0x133e   :  { %1794 = dma.done.wait [#allocation10], 64  }
0x133f   :  { %1795 = vsyncadd [#allocation10], 4294967232 }
0x1340   :  { %1399 = vsyncpa [#allocation3], 1 }
0x1341   :  { %1400 = vsyncpa [#allocation6], 1 }
0x1342   :  { %1401 = vsyncpa [#allocation4], 1 }
0x1343   :  { %1402 = vsyncpa [#allocation10], 1 }

</bundles_post_ra>
